<compile_context>
chip_gen: v6e
topology: v6e:2x2x1
jax: 0.10.0
libtpu: 0.0.40
codegen_flags: <defaults>
</compile_context>

<pallas_src>
import functools

import jax
import jax.numpy as jnp
from jax.experimental import pallas as pl
from jax.experimental.pallas import tpu as pltpu

_NEG_INF = -1e30          # finite "minus infinity" (avoids inf-inf NaN edges)
_IGNORE_INDEX = -100      # torch F.cross_entropy default


def _round_up(x, m):
    return ((x + m - 1) // m) * m


def _ceil_div(a, b):
    return -(-a // b)


def _pick_tile_n(n_tokens, tile_n):
    """Token-tile size.  Big tiles => the (D, V) lm_head is streamed from HBM
    fewer times (arithmetic intensity ~ tile_n FLOPs per weight byte).  But a
    medium problem must not collapse into a single tile: the token axis is the
    only 'parallel' grid axis, i.e. what feeds v7x's second TensorCore."""
    np8 = _round_up(max(n_tokens, 1), 8)
    if np8 <= tile_n:
        if np8 >= 256:
            # Split into two >=128-row tiles (full MXU pass each) instead of one.
            return _round_up(_ceil_div(np8, 2), 128)
        return np8
    return tile_n


def _vmem_limit_bytes(tile_n, tile_v, d):
    """Actual footprint of the pipelined tiles + in-kernel temporaries, with
    2x headroom, capped at 48 MiB so it is always safe on v7x (64 MiB VMEM)."""
    bf16, f32 = 2, 4
    need = (2 * tile_n * d * bf16          # hidden tile, double-buffered
            + 2 * d * tile_v * bf16        # lm_head tile, double-buffered
            + 2 * tile_n * 4               # labels tile
            + 2 * 128 * f32                # output partials
            + 3 * tile_n * 128 * f32       # scratch accumulators (lane-padded)
            + 4 * tile_n * tile_v * f32)   # logits / exp / select temps
    return int(min(max(2 * need, 16 << 20), 48 << 20))


def _weighted_ce_kernel(h_ref, w_ref, lab_ref, out_ref,
                        m_acc, l_acc, t_acc,
                        *, tile_v, vocab_size, ragged_vocab,
                        sot_id, sot_weight):
    """Grid = (token tiles [parallel], vocab tiles [arbitrary]).

    h_ref   : (tile_n, D)   bf16   decoder hidden states tile
    w_ref   : (D, tile_v)   bf16   lm_head weight tile (vocab-streamed)
    lab_ref : (tile_n, 1)   int32  target token ids
    out_ref : (1, 1, 128)   f32    per-token-tile partials
                                    lane 0 = sum(w[y]*nll), lane 1 = sum(w[y])
    m_acc/l_acc/t_acc : (tile_n, 1) f32 online-logsumexp / target-logit state
    """
    j = pl.program_id(1)

    @pl.when(j == 0)
    def _():
        m_acc[...] = jnp.full_like(m_acc, _NEG_INF)
        l_acc[...] = jnp.zeros_like(l_acc)
        t_acc[...] = jnp.zeros_like(t_acc)

    # lm_head projection for one vocab tile on the MXU (bf16 in, f32 acc).
    logits = jnp.dot(h_ref[...], w_ref[...],
                     preferred_element_type=jnp.float32)      # (tile_n, tile_v)

    # Global vocab column index of this tile.
    col = jax.lax.broadcasted_iota(jnp.int32, logits.shape, 1) + j * tile_v
    labels = lab_ref[...]                                     # (tile_n, 1) int32

    # Target-logit gather.  Garbage columns of a ragged last block have
    # col >= vocab_size and can never match a valid label, so no mask needed.
    t_acc[...] = t_acc[...] + jnp.sum(
        jnp.where(col == labels, logits, 0.0), axis=-1, keepdims=True)

    if ragged_vocab:
        # Only compiled in when V is not a multiple of tile_v: keeps garbage
        # columns of the (padded) last vocab block out of max / sumexp.
        logits = jnp.where(col < vocab_size, logits, _NEG_INF)

    # Online (running-max) logsumexp across vocab tiles.
    m_prev = m_acc[...]
    m_new = jnp.maximum(m_prev, jnp.max(logits, axis=-1, keepdims=True))
    l_acc[...] = (l_acc[...] * jnp.exp(m_prev - m_new)
                  + jnp.sum(jnp.exp(logits - m_new), axis=-1, keepdims=True))
    m_acc[...] = m_new

    @pl.when(j == pl.num_programs(1) - 1)
    def _():
        lse = m_acc[...] + jnp.log(l_acc[...])                # (tile_n, 1)
        nll = lse - t_acc[...]                                # (tile_n, 1)
        # torch cross_entropy: weight[y] (SOT id boosted), ignore_index=-100.
        valid = labels >= 0
        tok_w = jnp.where(valid,
                          jnp.where(labels == sot_id, sot_weight, 1.0),
                          0.0)
        num = jnp.sum(tok_w * nll)
        den = jnp.sum(tok_w)
        lane = jax.lax.broadcasted_iota(jnp.int32, out_ref.shape,
                                        out_ref.ndim - 1)
        out_ref[...] = jnp.where(lane == 0, num,
                                 jnp.where(lane == 1, den, 0.0))


def weighted_cross_entropy_loss(hidden, lm_head, labels, *,
                                sot_token_id, sot_weights,
                                tile_n=256, tile_v=1024):
    """hidden (N, D), lm_head (D, V), labels (N,) int32 -> scalar loss.

    Matches F.cross_entropy(logits, labels, weight=w) with w=ones,
    w[SOT]=SOT_weights, ignore_index=-100 (bf16 MXU feed, f32 accumulation).
    """
    N, D = hidden.shape
    D2, V = lm_head.shape
    assert D == D2

    tile_n = _pick_tile_n(N, tile_n)
    tile_v = min(tile_v, _round_up(V, 128))
    Np = _round_up(N, tile_n)

    # Token-axis pad is cheap (activation-sized); padded rows get ignore labels.
    if Np != N:
        hidden = jnp.pad(hidden, ((0, Np - N), (0, 0)))
        labels = jnp.pad(labels, ((0, Np - N),),
                         constant_values=_IGNORE_INDEX)
    # No vocab-axis pad of lm_head: the last vocab block is ragged and handled
    # by the in-kernel `col < vocab_size` mask (avoids a full (D, V) HBM copy).

    # MXU operands in bf16; params should already be stored bf16 so this is a
    # no-op on the big matrix in the steady state.
    if hidden.dtype != jnp.bfloat16:
        hidden = hidden.astype(jnp.bfloat16)
    if lm_head.dtype != jnp.bfloat16:
        # TODO(synk): fuse this cast into the weight producer (store head bf16).
        lm_head = lm_head.astype(jnp.bfloat16)
    labels2 = labels.reshape(Np, 1).astype(jnp.int32)

    n_tok_tiles = Np // tile_n
    n_voc_tiles = _ceil_div(V, tile_v)
    ragged_vocab = (V % tile_v) != 0

    kernel = functools.partial(_weighted_ce_kernel,
                               tile_v=tile_v,
                               vocab_size=V,
                               ragged_vocab=ragged_vocab,
                               sot_id=int(sot_token_id),
                               sot_weight=float(sot_weights))

    partials = pl.pallas_call(
        kernel,
        out_shape=jax.ShapeDtypeStruct((n_tok_tiles, 1, 128), jnp.float32),
        grid_spec=pltpu.PrefetchScalarGridSpec(
            num_scalar_prefetch=0,
            grid=(n_tok_tiles, n_voc_tiles),
            in_specs=[
                pl.BlockSpec((tile_n, D), lambda i, j: (i, 0)),   # hidden tile
                pl.BlockSpec((D, tile_v), lambda i, j: (0, j)),   # lm_head stream
                pl.BlockSpec((tile_n, 1), lambda i, j: (i, 0)),   # labels tile
            ],
            out_specs=pl.BlockSpec((1, 1, 128), lambda i, j: (i, 0, 0)),
            scratch_shapes=[
                pltpu.VMEM((tile_n, 1), jnp.float32),  # running max
                pltpu.VMEM((tile_n, 1), jnp.float32),  # running sumexp
                pltpu.VMEM((tile_n, 1), jnp.float32),  # target logit
            ],
        ),
        compiler_params=pltpu.CompilerParams(
            dimension_semantics=("parallel", "arbitrary"),
            vmem_limit_bytes=_vmem_limit_bytes(tile_n, tile_v, D),
        ),
    )(hidden, lm_head, labels2)

    num = jnp.sum(partials[:, 0, 0])
    den = jnp.sum(partials[:, 0, 1])
    # NOTE: if every label is ignore_index, den == 0 and this is NaN (torch
    # behaves the same); guard upstream if fully-padded batches are possible.
    return num / den


def text_mapping_forward(decoder_input_ids, decoder_labels, params,
                         *, sot_token_id, sot_weights):
    """Mirrors TextMappingModel.forward for the non-copy branch:
    class-weight vector (ones, SOT boosted), LM head, weighted CE -> {'loss'}."""
    emb = params["embedding"]       # (V, D) bf16
    lm_head = params["lm_head"]     # (D, V) bf16
    D = emb.shape[1]

    # TODO(synk): stand-in for bart_outputs (pretrained encoder/decoder):
    # deterministic embedding lookup used as "decoder hidden states".
    B, T = decoder_input_ids.shape
    hidden = emb[decoder_input_ids].reshape(B * T, D)
    labels = decoder_labels.reshape(B * T)

    loss = weighted_cross_entropy_loss(hidden, lm_head, labels,
                                       sot_token_id=sot_token_id,
                                       sot_weights=sot_weights)
    return {"loss": loss}


def _reference_loss(decoder_input_ids, decoder_labels, params,
                    *, sot_token_id, sot_weights):
    emb = params["embedding"]
    lm_head = params["lm_head"]
    V, D = emb.shape
    w = jnp.ones((V,), jnp.float32).at[sot_token_id].set(sot_weights)
    B, T = decoder_input_ids.shape
    h = emb[decoder_input_ids].reshape(B * T, D).astype(jnp.bfloat16)
    # Same bf16-in / f32-accumulate matmul as the kernel's MXU path.
    logits = jnp.dot(h, lm_head.astype(jnp.bfloat16),
                     preferred_element_type=jnp.float32)
    labels = decoder_labels.reshape(-1)
    safe = jnp.clip(labels, 0, V - 1)
    logp = jax.nn.log_softmax(logits, axis=-1)
    nll = -jnp.take_along_axis(logp, safe[:, None], axis=-1)[:, 0]
    tw = jnp.where(labels >= 0, w[safe], 0.0)
    nll = jnp.where(labels >= 0, nll, 0.0)
    return jnp.sum(tw * nll) / jnp.sum(tw)


if __name__ == "__main__":
    def make_case(key, B, T, D, V):
        k_emb, k_head, k_ids, k_lab = jax.random.split(key, 4)
        params = {
            "embedding": (jax.random.normal(k_emb, (V, D), jnp.float32)
                          * 0.02).astype(jnp.bfloat16),
            "lm_head":   (jax.random.normal(k_head, (D, V), jnp.float32)
                          * 0.02).astype(jnp.bfloat16),
        }
        ids = jax.random.randint(k_ids, (B, T), 0, V, jnp.int32)
        lab = jax.random.randint(k_lab, (B, T), 0, V, jnp.int32)
        return params, ids, lab

    key = jax.random.PRNGKey(0)
    k1, k2 = jax.random.split(key)

    # Primary small config consistent with the module's forward.
    SOT_ID, SOT_W = 5, 10.0
    params, ids, lab = make_case(k1, B=2, T=8, D=32, V=128)
    res = text_mapping_forward(ids, lab, params,
                               sot_token_id=SOT_ID, sot_weights=SOT_W)
    loss = jax.block_until_ready(res["loss"])
    ref = _reference_loss(ids, lab, params,
                          sot_token_id=SOT_ID, sot_weights=SOT_W)
    assert jnp.isfinite(loss), loss
    assert jnp.allclose(loss, ref, rtol=1e-3, atol=1e-3), (loss, ref)

    # Secondary shape check: ragged vocab block, multiple token tiles,
    # token-axis padding, ignore_index labels.
    params2, ids2, lab2 = make_case(k2, B=4, T=72, D=64, V=1000)
    lab2 = lab2.at[:, -3:].set(_IGNORE_INDEX)
    res2 = text_mapping_forward(ids2, lab2, params2,
                                sot_token_id=7, sot_weights=4.0)
    loss2 = jax.block_until_ready(res2["loss"])
    ref2 = _reference_loss(ids2, lab2, params2,
                           sot_token_id=7, sot_weights=4.0)
    assert jnp.isfinite(loss2), loss2
    assert jnp.allclose(loss2, ref2, rtol=2e-3, atol=2e-3), (loss2, ref2)

    print("KERNEL_OK")
</pallas_src>

<mosaic_0001>
module attributes {stable_mosaic.version = 11 : i64} {
  func.func @_weighted_ce_kernel(%arg0: i32, %arg1: i32, %arg2: memref<16x32xbf16, #tpu.memory_space<vmem>>, %arg3: memref<32x128xbf16, #tpu.memory_space<vmem>>, %arg4: memref<16x1xi32, #tpu.memory_space<vmem>>, %arg5: memref<1x1x128xf32, #tpu.memory_space<vmem>>, %arg6: memref<16x1xf32, #tpu.memory_space<vmem>>, %arg7: memref<16x1xf32, #tpu.memory_space<vmem>>, %arg8: memref<16x1xf32, #tpu.memory_space<vmem>>) attributes {dimension_semantics = [#tpu.dimension_semantics<parallel>, #tpu.dimension_semantics<arbitrary>], iteration_bounds = array<i64: 1, 1>, scalar_prefetch = 0 : i64, scratch_operands = 3 : i64, tpu.core_type = #tpu.core_type<tc>, window_params = [{transform_indices = @transform_0, window_bounds = array<i64: 16, 32>}, {transform_indices = @transform_1, window_bounds = array<i64: 32, 128>}, {transform_indices = @transform_2, window_bounds = array<i64: 16, 1>}, {transform_indices = @transform_3, window_bounds = array<i64: 1, 1, 128>}]} {
    %c0_i32 = arith.constant 0 : i32
    %0 = arith.cmpi eq, %arg1, %c0_i32 : i32
    %1 = arith.extui %0 : i1 to i32
    %c0_i32_0 = arith.constant 0 : i32
    %2 = arith.cmpi ne, %1, %c0_i32_0 : i32
    scf.if %2 {
      %cst_24 = arith.constant -1.000000e+30 : f32
      %39 = vector.broadcast %cst_24 : f32 to vector<16x1xf32>
      %c0_25 = arith.constant 0 : index
      %c0_26 = arith.constant 0 : index
      %40 = vector.load %arg6[%c0_25, %c0_26] : memref<16x1xf32, #tpu.memory_space<vmem>>, vector<16x1xf32>
      tpu.vector_store %arg6[%c0_25, %c0_26], %39 {strides = array<i32>} : memref<16x1xf32, #tpu.memory_space<vmem>>, vector<16x1xf32>,
      %cst_27 = arith.constant 0.000000e+00 : f32
      %41 = vector.broadcast %cst_27 : f32 to vector<16x1xf32>
      %c0_28 = arith.constant 0 : index
      %c0_29 = arith.constant 0 : index
      %42 = vector.load %arg7[%c0_28, %c0_29] : memref<16x1xf32, #tpu.memory_space<vmem>>, vector<16x1xf32>
      tpu.vector_store %arg7[%c0_28, %c0_29], %41 {strides = array<i32>} : memref<16x1xf32, #tpu.memory_space<vmem>>, vector<16x1xf32>,
      %cst_30 = arith.constant 0.000000e+00 : f32
      %43 = vector.broadcast %cst_30 : f32 to vector<16x1xf32>
      %c0_31 = arith.constant 0 : index
      %c0_32 = arith.constant 0 : index
      %44 = vector.load %arg8[%c0_31, %c0_32] : memref<16x1xf32, #tpu.memory_space<vmem>>, vector<16x1xf32>
      tpu.vector_store %arg8[%c0_31, %c0_32], %43 {strides = array<i32>} : memref<16x1xf32, #tpu.memory_space<vmem>>, vector<16x1xf32>,
    } else {
    }
    %c0 = arith.constant 0 : index
    %c0_1 = arith.constant 0 : index
    %3 = vector.load %arg2[%c0, %c0_1] : memref<16x32xbf16, #tpu.memory_space<vmem>>, vector<16x32xbf16>
    %c0_2 = arith.constant 0 : index
    %c0_3 = arith.constant 0 : index
    %4 = vector.load %arg3[%c0_2, %c0_3] : memref<32x128xbf16, #tpu.memory_space<vmem>>, vector<32x128xbf16>
    %cst = arith.constant dense<0.000000e+00> : vector<16x128xf32>
    %5 = tpu.matmul %3, %4, %cst {dimension_numbers = #tpu.dot_dimension_numbers<[1], [0], [0], [1], [0, 0, 1, 1], [], []>} : vector<16x32xbf16>, vector<32x128xbf16>, vector<16x128xf32> -> vector<16x128xf32>
    %6 = tpu.iota {dimensions = array<i32: 1>} : vector<16x128xi32>
    %c128_i32 = arith.constant 128 : i32
    %7 = arith.muli %arg1, %c128_i32 : i32
    %8 = vector.broadcast %7 : i32 to vector<16x128xi32>
    %9 = arith.addi %6, %8 : vector<16x128xi32>
    %c0_4 = arith.constant 0 : index
    %c0_5 = arith.constant 0 : index
    %10 = vector.load %arg4[%c0_4, %c0_5] : memref<16x1xi32, #tpu.memory_space<vmem>>, vector<16x1xi32>
    %c0_6 = arith.constant 0 : index
    %c0_7 = arith.constant 0 : index
    %11 = vector.load %arg8[%c0_6, %c0_7] : memref<16x1xf32, #tpu.memory_space<vmem>>, vector<16x1xf32>
    %12 = vector.broadcast %10 : vector<16x1xi32> to vector<16x128xi32>
    %13 = arith.cmpi eq, %9, %12 : vector<16x128xi32>
    %cst_8 = arith.constant 0.000000e+00 : f32
    %14 = vector.broadcast %cst_8 : f32 to vector<16x128xf32>
    %15 = arith.select %13, %5, %14 : vector<16x128xi1>, vector<16x128xf32>
    %cst_9 = arith.constant dense<0.000000e+00> : vector<16xf32>
    %16 = vector.multi_reduction <add>, %15, %cst_9 [1] : vector<16x128xf32> to vector<16xf32>
    %17 = vector.shape_cast %16 : vector<16xf32> to vector<16x1xf32>
    %18 = arith.addf %11, %17 : vector<16x1xf32>
    %c0_10 = arith.constant 0 : index
    %c0_11 = arith.constant 0 : index
    %19 = vector.load %arg8[%c0_10, %c0_11] : memref<16x1xf32, #tpu.memory_space<vmem>>, vector<16x1xf32>
    tpu.vector_store %arg8[%c0_10, %c0_11], %18 {strides = array<i32>} : memref<16x1xf32, #tpu.memory_space<vmem>>, vector<16x1xf32>,
    %c0_12 = arith.constant 0 : index
    %c0_13 = arith.constant 0 : index
    %20 = vector.load %arg6[%c0_12, %c0_13] : memref<16x1xf32, #tpu.memory_space<vmem>>, vector<16x1xf32>
    %cst_14 = arith.constant dense<0xFF800000> : vector<16xf32>
    %21 = vector.multi_reduction <maximumf>, %5, %cst_14 [1] : vector<16x128xf32> to vector<16xf32>
    %22 = vector.shape_cast %21 : vector<16xf32> to vector<16x1xf32>
    %23 = arith.maximumf %20, %22 : vector<16x1xf32>
    %c0_15 = arith.constant 0 : index
    %c0_16 = arith.constant 0 : index
    %24 = vector.load %arg7[%c0_15, %c0_16] : memref<16x1xf32, #tpu.memory_space<vmem>>, vector<16x1xf32>
    %25 = arith.subf %20, %23 : vector<16x1xf32>
    %26 = math.exp %25 : vector<16x1xf32>
    %27 = arith.mulf %24, %26 : vector<16x1xf32>
    %28 = vector.broadcast %23 : vector<16x1xf32> to vector<16x128xf32>
    %29 = arith.subf %5, %28 : vector<16x128xf32>
    %30 = math.exp %29 : vector<16x128xf32>
    %cst_17 = arith.constant dense<0.000000e+00> : vector<16xf32>
    %31 = vector.multi_reduction <add>, %30, %cst_17 [1] : vector<16x128xf32> to vector<16xf32>
    %32 = vector.shape_cast %31 : vector<16xf32> to vector<16x1xf32>
    %33 = arith.addf %27, %32 : vector<16x1xf32>
    %c0_18 = arith.constant 0 : index
    %c0_19 = arith.constant 0 : index
    %34 = vector.load %arg7[%c0_18, %c0_19] : memref<16x1xf32, #tpu.memory_space<vmem>>, vector<16x1xf32>
    tpu.vector_store %arg7[%c0_18, %c0_19], %33 {strides = array<i32>} : memref<16x1xf32, #tpu.memory_space<vmem>>, vector<16x1xf32>,
    %c0_20 = arith.constant 0 : index
    %c0_21 = arith.constant 0 : index
    %35 = vector.load %arg6[%c0_20, %c0_21] : memref<16x1xf32, #tpu.memory_space<vmem>>, vector<16x1xf32>
    tpu.vector_store %arg6[%c0_20, %c0_21], %23 {strides = array<i32>} : memref<16x1xf32, #tpu.memory_space<vmem>>, vector<16x1xf32>,
    %c0_i32_22 = arith.constant 0 : i32
    %36 = arith.cmpi eq, %arg1, %c0_i32_22 : i32
    %37 = arith.extui %36 : i1 to i32
    %c0_i32_23 = arith.constant 0 : i32
    %38 = arith.cmpi ne, %37, %c0_i32_23 : i32
    scf.if %38 {
      %c0_24 = arith.constant 0 : index
      %c0_25 = arith.constant 0 : index
      %39 = vector.load %arg6[%c0_24, %c0_25] : memref<16x1xf32, #tpu.memory_space<vmem>>, vector<16x1xf32>
      %c0_26 = arith.constant 0 : index
      %c0_27 = arith.constant 0 : index
      %40 = vector.load %arg7[%c0_26, %c0_27] : memref<16x1xf32, #tpu.memory_space<vmem>>, vector<16x1xf32>
      %41 = math.log %40 : vector<16x1xf32>
      %42 = arith.addf %39, %41 : vector<16x1xf32>
      %c0_28 = arith.constant 0 : index
      %c0_29 = arith.constant 0 : index
      %43 = vector.load %arg8[%c0_28, %c0_29] : memref<16x1xf32, #tpu.memory_space<vmem>>, vector<16x1xf32>
      %44 = arith.subf %42, %43 : vector<16x1xf32>
      %c0_i32_30 = arith.constant 0 : i32
      %45 = vector.broadcast %c0_i32_30 : i32 to vector<16x1xi32>
      %46 = arith.cmpi sge, %10, %45 : vector<16x1xi32>
      %c5_i32 = arith.constant 5 : i32
      %47 = vector.broadcast %c5_i32 : i32 to vector<16x1xi32>
      %48 = arith.cmpi eq, %10, %47 : vector<16x1xi32>
      %cst_31 = arith.constant 1.000000e+01 : f32
      %cst_32 = arith.constant 1.000000e+00 : f32
      %49 = vector.broadcast %cst_31 : f32 to vector<16x1xf32>
      %50 = vector.broadcast %cst_32 : f32 to vector<16x1xf32>
      %51 = arith.select %48, %49, %50 : vector<16x1xi1>, vector<16x1xf32>
      %cst_33 = arith.constant 0.000000e+00 : f32
      %52 = vector.broadcast %cst_33 : f32 to vector<16x1xf32>
      %53 = arith.select %46, %51, %52 : vector<16x1xi1>, vector<16x1xf32>
      %54 = arith.mulf %53, %44 : vector<16x1xf32>
      %55 = vector.shape_cast %54 : vector<16x1xf32> to vector<1x16x1xf32>
      %cst_34 = arith.constant dense<0.000000e+00> : vector<1xf32>
      %56 = vector.multi_reduction <add>, %55, %cst_34 [1, 2] : vector<1x16x1xf32> to vector<1xf32>
      %57 = vector.shape_cast %56 : vector<1xf32> to vector<1x1x1xf32>
      %58 = vector.extract %57[0, 0, 0] : f32 from vector<1x1x1xf32>
      %59 = vector.shape_cast %53 : vector<16x1xf32> to vector<1x16x1xf32>
      %cst_35 = arith.constant dense<0.000000e+00> : vector<1xf32>
      %60 = vector.multi_reduction <add>, %59, %cst_35 [1, 2] : vector<1x16x1xf32> to vector<1xf32>
      %61 = vector.shape_cast %60 : vector<1xf32> to vector<1x1x1xf32>
      %62 = vector.extract %61[0, 0, 0] : f32 from vector<1x1x1xf32>
      %63 = tpu.iota {dimensions = array<i32: 2>} : vector<1x1x128xi32>
      %c0_i32_36 = arith.constant 0 : i32
      %64 = vector.broadcast %c0_i32_36 : i32 to vector<1x1x128xi32>
      %65 = arith.cmpi eq, %63, %64 : vector<1x1x128xi32>
      %c1_i32 = arith.constant 1 : i32
      %66 = vector.broadcast %c1_i32 : i32 to vector<1x1x128xi32>
      %67 = arith.cmpi eq, %63, %66 : vector<1x1x128xi32>
      %cst_37 = arith.constant 0.000000e+00 : f32
      %68 = vector.broadcast %62 : f32 to vector<1x1x128xf32>
      %69 = vector.broadcast %cst_37 : f32 to vector<1x1x128xf32>
      %70 = arith.select %67, %68, %69 : vector<1x1x128xi1>, vector<1x1x128xf32>
      %71 = vector.broadcast %58 : f32 to vector<1x1x128xf32>
      %72 = arith.select %65, %71, %70 : vector<1x1x128xi1>, vector<1x1x128xf32>
      %c0_38 = arith.constant 0 : index
      %c0_39 = arith.constant 0 : index
      %c0_40 = arith.constant 0 : index
      %73 = vector.load %arg5[%c0_38, %c0_39, %c0_40] : memref<1x1x128xf32, #tpu.memory_space<vmem>>, vector<1x1x128xf32>
      tpu.vector_store %arg5[%c0_38, %c0_39, %c0_40], %72 {strides = array<i32>} : memref<1x1x128xf32, #tpu.memory_space<vmem>>, vector<1x1x128xf32>,
    } else {
    }
    return
  }
  func.func @transform_0(%arg0: i32, %arg1: i32) -> (i32, i32) {
    %c0_i32 = arith.constant 0 : i32
    %c0_i32_0 = arith.constant 0 : i32
    return %arg0, %c0_i32 : i32, i32
  }
  func.func @transform_1(%arg0: i32, %arg1: i32) -> (i32, i32) {
    %c0_i32 = arith.constant 0 : i32
    %c0_i32_0 = arith.constant 0 : i32
    return %c0_i32, %arg1 : i32, i32
  }
  func.func @transform_2(%arg0: i32, %arg1: i32) -> (i32, i32) {
    %c0_i32 = arith.constant 0 : i32
    %c0_i32_0 = arith.constant 0 : i32
    return %arg0, %c0_i32 : i32, i32
  }
  func.func @transform_3(%arg0: i32, %arg1: i32) -> (i32, i32, i32) {
    %c0_i32 = arith.constant 0 : i32
    %c0_i32_0 = arith.constant 0 : i32
    %c0_i32_1 = arith.constant 0 : i32
    return %arg0, %c0_i32, %c0_i32_0 : i32, i32, i32
  }
}

</mosaic_0001>

<bundles_post_ra>
// kernel: tpu_custom_call.1
= control target key start
LH: loop header
LB: loop body
LE: loop exit
PB: predicated region body
PF: predicated region fallthrough
CT: control target
= control target key end

     0   :  { %8 = vsyncpa [#allocation6], 0  ;;  %s422_s0 = inlined_call_operand.hbm [shape: bf16[16,32], index: 0, kind: input, shape index: {}]   ;;  %s423_s1 = inlined_call_operand.vmem [shape: bf16[32,128], index: 1, kind: input, shape index: {}]   ;;  %s424_s2 = inlined_call_operand.vmem [shape: s32[16,1], index: 2, kind: input, shape index: {}]   ;;  %s425_s3 = inlined_call_operand.hbm [shape: f32[1,1,128], index: 3, kind: output, shape index: {}]  }
   0x1   :  { %9 = vsyncpa [#allocation7], 0  ;;  %s343_s12 = smov [#allocation5]  }
   0x2   :  { %s15_s13 = sshll.u32 %s343_s12, 4  ;;  %s16_s13 = int_to_ptr.vmem [resolvable:$true] %s15_s13 }
   0x3   :  { %s307_s14 = scalar_lea.vmem %s16_s13, 128  ;;  %p312_p1 = scmp.lt.s32.totalorder %s16_s13, %s16_s13 }
   0x4   :  { %p308_p0 = scmp.ne.s32.totalorder %s16_s13, %s307_s14  ;;  %p313_p2 = scmp.lt.s32.totalorder %s307_s14, %s307_s14 }
   0x6   :  { %p314_p3 = por %p313_p2, %p312_p1 }
   0x8   :  { %p315_p4 = pnand %p314_p3, %p308_p0 }
   0xa   :  { %318 = shalt.err (!%p315_p4)
}
   0xb   :  { %s344_s15 = smov 64   ;;  %s345_s16 = smov 4  }
   0xc   :  { %21 = dma.hbm_to_vmem [thread:$0]  %s422_s0, 128, %s16_s13, [#allocation6], %s344_s15, %s344_s15, %s345_s16  }
   0xd   :  { %339 = dma.done.wait [#allocation6], 128  }
   0xe   :  { %340 = vsyncadd [#allocation6], 4294967168  ;;  %v346_v0 = vmov 0.0   ;;  %vm347_vm0 = vmmov 0   ;;  %v284_v1 = vld [vmem:[%s423_s1 + $0x8] sm:$0xff]   ;;  %v285_v2 = vld [vmem:[%s423_s1] sm:$0xff]   ;;  %v109_v18 = vlaneseq }
   0xf   :  { %261 = vmatprep.subr.bf16.mxu0 %v346_v0  ;;  %265 = vmatprep.mubr.msk.bf16.mxu0 %vm347_vm0, %v346_v0  ;;  %v286_v3 = vld [vmem:[#allocation5] sm:$0xff]   ;;  %vm64_vm1 = vcmask 261120   ;;  %v348_v4 = vmov 0   ;;  %vm34_vm2 = vcmask 7168   ;;  %v349_v5 = vmov -1e+30  }
  0x10   :  { %262 = vmatpush3.bf16.msra.mxu0 %v284_v1  ;;  %283 = vset.pattern.permute.xlu0 %v348_v4  ;;  %35 = vst.msk [vmem:[#allocation2] sm:$0xff] %vm34_vm2, %v349_v5  ;;  %36 = vst.msk [vmem:[#allocation2 + $0x8] sm:$0xff] %vm34_vm2, %v349_v5  ;;  %v390_v10 = vld [vmem:[%s424_s2] sm:$0xff]  ;;  %v398_v20 = vld [vmem:[%s424_s2 + $0x8] sm:$0xff]  ;;  %v400_v21 = vand.u32 127, %v109_v18  ;;  %v350_v57 = vmov 1.0  }
  0x11   :  { %263 = vmatprep.subr.bf16.mxu0 %v346_v0  ;;  %282 = vset.pattern.permute.xlu1 %v348_v4  ;;  %37 = vst.msk [vmem:[#allocation3] sm:$0xff] %vm34_vm2, %v346_v0  ;;  %38 = vst.msk [vmem:[#allocation3 + $0x8] sm:$0xff] %vm34_vm2, %v346_v0  ;;  %vm200_vm5 = vcmp.eq.s32.totalorder %v390_v10, 5  ;;  %vm201_vm6 = vcmp.eq.s32.totalorder %v398_v20, 5  ;;  %vm198_vm7 = vcmp.ge.s32.totalorder %v390_v10, 0  ;;  %vm199_vm8 = vcmp.ge.s32.totalorder %v398_v20, 0 }
  0x12   :  { %39 = vst.msk [vmem:[#allocation4] sm:$0xff] %vm34_vm2, %v346_v0  ;;  %40 = vst.msk [vmem:[#allocation4 + $0x8] sm:$0xff] %vm34_vm2, %v346_v0  ;;  %v202_v58 = vsel %vm200_vm5, 10.0, %v350_v57  ;;  %v203_v62 = vsel %vm201_vm6, 10.0, %v350_v57  ;;  %vm233_vm9 = vcmp.eq.s32.totalorder %v400_v21, 1  ;;  %s351_s25 = smov [#allocation8]  }
  0x13   :  { %v204_v1 = vsel %vm198_vm7, %v202_v58, 0.0  ;;  %v205_v4 = vsel %vm199_vm8, %v203_v62, 0.0  ;;  %s245_s26 = sshll.u32 %s351_s25, 4  ;;  %vm232_vm10 = vcmp.eq.s32.totalorder %v400_v21, 0  ;;  %s246_s26 = int_to_ptr.vmem [resolvable:$true] %s245_s26 }
  0x14   :  { %264 = vmatpush3.bf16.msra.mxu0 %v285_v2  ;;  %s319_s28 = scalar_lea.vmem %s246_s26, 16  ;;  %s323_s29 = scalar_lea.vmem %s246_s26, 32 }
  0x15   :  { %p320_p5 = scmp.ne.s32.totalorder %s246_s26, %s319_s28  ;;  %p324_p6 = scmp.lt.s32.totalorder %s246_s26, %s246_s26 }
  0x16   :  { %p325_p7 = scmp.lt.s32.totalorder %s323_s29, %s319_s28 }
  0x17   :  { %266 = vmatmul.mubr.msk.bf16.vlgmr.msra.gmra.mxu0 %vm64_vm1, %v286_v3  ;;  %v137_v11 = vld [vmem:[#allocation2] sm:$0xff]  ;;  %v138_v14 = vld [vmem:[#allocation2 + $0x8] sm:$0xff] }
  0x18   :  { %v145_v40 = vld [vmem:[#allocation3] sm:$0xff]  ;;  %v146_v44 = vld [vmem:[#allocation3 + $0x8] sm:$0xff]  ;;  %p326_p8 = por %p325_p7, %p324_p6 }
  0x19   :  { %v116_v33 = vld [vmem:[#allocation4] sm:$0xff]  ;;  %v117_v49 = vld [vmem:[#allocation4 + $0x8] sm:$0xff] }
  0x1a   :  { %p327_p9 = pnand %p326_p8, %p320_p5 }
  0xd7   :  { %v102_v6 = vpop.f32.mrf.mxu0 }
  0xd8   :  { %139 = vmax.xlane.f32.xlu0 %v102_v6 }
  0xd9   :  { %v267_v7 = vpop.f32.mrf.mxu0 }
  0xdb   :  { %v105_v8 = vpop.f32.mrf.mxu0 }
  0xdc   :  { %141 = vmax.xlane.f32.xlu0 %v105_v8 }
  0xdd   :  { %v268_v9 = vpop.f32.mrf.mxu0 }
  0xf2   :  { %119 = vperm.xlu0 %283, %v390_v10  }
 0x161   :  { %v140_v12 = vpop.xlane.xlu0 %139 }
 0x162   :  { %v143_v13 = vmax.f32 %v137_v11, %v140_v12  ;;  %v221_v12 = vsel %vm34_vm2, %v205_v4, 0.0 }
 0x164   :  { %v147_v15 = vsub.f32 %v137_v11, %v143_v13  ;;  %179 = vst.msk [vmem:[#allocation2] sm:$0xff] %vm34_vm2, %v143_v13  ;;  %157 = vperm.xlu1 %282, %v143_v13   ;;  %v220_v11 = vsel %vm34_vm2, %v204_v1, 0.0 }
 0x165   :  { %v142_v16 = vpop.xlane.xlu0 %141 }
 0x166   :  { %v144_v17 = vmax.f32 %v138_v14, %v142_v16  ;;  %v149_v37 = vmul.f32 1.442695, %v147_v15 }
 0x168   :  { %v148_v19 = vsub.f32 %v138_v14, %v144_v17  ;;  %180 = vst.msk [vmem:[#allocation2 + $0x8] sm:$0xff] %vm34_vm2, %v144_v17  ;;  %162 = vperm.xlu1 %282, %v144_v17   ;;  %v222_v14 = vadd.f32 %v221_v12, %v220_v11 }
 0x16a   :  { %v151_v38 = vmul.f32 1.442695, %v148_v19 }
 0x16b   :  { %v184_v56 = vld [vmem:[#allocation2] sm:$0xff] }
 0x16c   :  { %122 = vperm.xlu1 %282, %v398_v20  }
 0x16d   :  { %v120_v22 = vpop.permute.xlu0 %119 }
 0x16e   :  { %vm124_vm3 = vcmp.eq.s32.totalorder %v400_v21, %v120_v22 }
 0x16f   :  { %v126_v23 = vsel %vm124_vm3, %v102_v6, 0.0  ;;  %v185_v2 = vld [vmem:[#allocation2 + $0x8] sm:$0xff] }
 0x170   :  { %128 = vadd.xlane.f32.xlu0 %v126_v23 }
 0x1df   :  { %v158_v24 = vpop.permute.xlu1 %157 }
 0x1e0   :  { %v165_v25 = vsub.f32 %v102_v6, %v158_v24 }
 0x1e2   :  { %v167_v26 = vmul.f32 1.442695, %v165_v25 }
 0x1e3   :  { %v163_v27 = vpop.permute.xlu1 %162 }
 0x1e4   :  { %287 = vpow2.f32 %v167_v26  ;;  %v166_v28 = vsub.f32 %v105_v8, %v163_v27 }
 0x1e6   :  { %v169_v29 = vmul.f32 1.442695, %v166_v28 }
 0x1e7   :  { %v123_v31 = vpop.permute.xlu1 %122 }
 0x1e8   :  { %289 = vpow2.f32 %v169_v29  ;;  %vm125_vm4 = vcmp.eq.s32.totalorder %v400_v21, %v123_v31 }
 0x1e9   :  { %v127_v35 = vsel %vm125_vm4, %v105_v8, 0.0  ;;  %291 = vpow2.f32 %v149_v37 }
 0x1ea   :  { %293 = vpow2.f32 %v151_v38 }
 0x1f1   :  { %v288_v30 = vpop.eup %287 }
 0x1f2   :  { %171 = vadd.xlane.f32.xlu1 %v288_v30 }
 0x1f5   :  { %v290_v32 = vpop.eup %289 }
 0x1f6   :  { %173 = vadd.xlane.f32.xlu1 %v290_v32  ;;  %v292_v39 = vpop.eup %291 }
 0x1f7   :  { %v153_v41 = vmul.f32 %v292_v39, %v145_v40  ;;  %v294_v42 = vpop.eup %293 }
 0x1f8   :  { %v154_v46 = vmul.f32 %v294_v42, %v146_v44 }
 0x1f9   :  { %v129_v34 = vpop.xlane.xlu0 %128 }
 0x1fa   :  { %v132_v36 = vadd.f32 %v129_v34, %v116_v33  ;;  %130 = vadd.xlane.f32.xlu1 %v127_v35 }
 0x1fc   :  { %135 = vst.msk [vmem:[#allocation4] sm:$0xff] %vm34_vm2, %v132_v36 }
 0x203   :  { %v194_v61 = vld [vmem:[#allocation4] sm:$0xff] }
 0x27b   :  { %v172_v43 = vpop.xlane.xlu1 %171 }
 0x27c   :  { %v175_v45 = vadd.f32 %v172_v43, %v153_v41 }
 0x27e   :  { %177 = vst.msk [vmem:[#allocation3] sm:$0xff] %vm34_vm2, %v175_v45 }
 0x27f   :  { %v174_v47 = vpop.xlane.xlu1 %173 }
 0x280   :  { %v176_v48 = vadd.f32 %v174_v47, %v154_v46 }
 0x282   :  { %178 = vst.msk [vmem:[#allocation3 + $0x8] sm:$0xff] %vm34_vm2, %v176_v48 }
 0x283   :  { %v131_v50 = vpop.xlane.xlu1 %130 }
 0x284   :  { %v133_v51 = vadd.f32 %v131_v50, %v117_v49 }
 0x285   :  { %v186_v52 = vld [vmem:[#allocation3] sm:$0xff] }
 0x286   :  { %136 = vst.msk [vmem:[#allocation4 + $0x8] sm:$0xff] %vm34_vm2, %v133_v51  ;;  %295 = vlog2.f32 %v186_v52 }
 0x289   :  { %v187_v53 = vld [vmem:[#allocation3 + $0x8] sm:$0xff] }
 0x28a   :  { %297 = vlog2.f32 %v187_v53 }
 0x28d   :  { %v195_v5 = vld [vmem:[#allocation4 + $0x8] sm:$0xff] }
 0x293   :  { %v296_v54 = vpop.eup %295 }
 0x294   :  { %v189_v55 = vmul.f32 0.6931472, %v296_v54 }
 0x296   :  { %v192_v59 = vadd.f32 %v189_v55, %v184_v56 }
 0x297   :  { %v298_v60 = vpop.eup %297 }
 0x298   :  { %v191_v63 = vmul.f32 0.6931472, %v298_v60  ;;  %v196_v0 = vsub.f32 %v192_v59, %v194_v61 }
 0x29a   :  { %v193_v3 = vadd.f32 %v191_v63, %v185_v2  ;;  %v206_v7 = vmul.f32 %v204_v1, %v196_v0 }
 0x29c   :  { %v197_v6 = vsub.f32 %v193_v3, %v195_v5  ;;  %v208_v9 = vsel %vm34_vm2, %v206_v7, 0.0 }
 0x29e   :  { %v207_v8 = vmul.f32 %v205_v4, %v197_v6 }
 0x2a0   :  { %v209_v10 = vsel %vm34_vm2, %v207_v8, 0.0 }
 0x2a1   :  { %v210_v13 = vadd.f32 %v209_v10, %v208_v9 }
 0x2a3   :  { %211 = vadd.xlane.f32.xlu1 %v210_v13 }
 0x2a7   :  { %223 = vadd.xlane.f32.xlu1 %v222_v14 }
 0x32c   :  { %v212_v15 = vpop.xlane.xlu1 %211 }
 0x32d   :  { %v213_v16 = vrot.slane %v212_v15, 4 }
 0x32f   :  { %v214_v17 = vadd.f32 %v213_v16, %v212_v15 }
 0x330   :  { %v224_v18 = vpop.xlane.xlu1 %223 }
 0x331   :  { %v215_v19 = vrot.slane %v214_v17, 2  ;;  %v225_v20 = vrot.slane %v224_v18, 4 }
 0x333   :  { %v226_v22 = vadd.f32 %v225_v20, %v224_v18  ;;  %v216_v23 = vadd.f32 %v215_v19, %v214_v17 }
 0x335   :  { %v227_v24 = vrot.slane %v226_v22, 2  ;;  %v217_v25 = vrot.slane %v216_v23, 1 }
 0x337   :  { %v228_v26 = vadd.f32 %v227_v24, %v226_v22  ;;  %v218_v27 = vadd.f32 %v217_v25, %v216_v23 }
 0x339   :  { %269 = vpush %v218_v27  ;;  %v229_v28 = vrot.slane %v228_v26, 1 }
 0x33b   :  { %v230_v29 = vadd.f32 %v229_v28, %v228_v26 }
 0x33d   :  { %271 = vpush %v230_v29 }
 0x36a   :  { %s270_s2 = spop %269 }
 0x36b   :  { %v236_v31 = vstv %s270_s2 }
 0x36e   :  { %s272_s27 = spop %271 }
 0x36f   :  { %v234_v30 = vstv %s272_s27 }
 0x370   :  { %v235_v32 = vsel %vm233_vm9, %v234_v30, 0.0 }
 0x371   :  { %v237_v33 = vsel %vm232_vm10, %v236_v31, %v235_v32 }
 0x372   :  { %238 = vst [vmem:[#allocation8] sm:$0x1] %v237_v33 }
 0x373   :  { %330 = shalt.err (!%p327_p9)
}
 0x374   :  { %248 = dma.vmem_to_hbm [thread:$0]  %s246_s26, 16, %s425_s3, [#allocation7]  }
 0x375   :  { %341 = dma.done.wait [#allocation7], 16  }
 0x376   :  { %342 = vsyncadd [#allocation7], 4294967280 }
 0x377   :  { %252 = vsyncpa [#allocation6], 1 }
 0x378   :  { %253 = vsyncpa [#allocation7], 1 }

</bundles_post_ra>
